<compile_context>
chip_gen: v7x
topology: tpu7x:2x2x1
jax: 0.10.0
libtpu: 0.0.40
codegen_flags: <defaults>
</compile_context>

<pallas_src>
import functools

import numpy as np
import jax
import jax.numpy as jnp
from jax import lax
from jax.experimental import pallas as pl
from jax.experimental.pallas import tpu as pltpu


def _round_up(x, m):
    return (x + m - 1) // m * m


def _scoped_vmem_limit_bytes():
    """Per-generation scoped VMEM limit: ~3/4 of physical, capped at 96 MiB."""
    cap = 64 * 1024 * 1024                        # safe floor (v7x per-TC VMEM)
    try:
        info = pltpu.get_tpu_info()
        cap = int(getattr(info, "vmem_capacity_bytes", cap))
    except Exception:
        pass
    return int(min(cap * 3 // 4, 96 * 1024 * 1024))


def _choose_tile_n(N, D, x_itemsize, out_itemsize, g_pad, num_feat, vmem_limit):
    # Resident bytes independent of tile_n: per-graph tables (double-buffered),
    # f32 accumulator scratch, tiny irrep tables.
    fixed = 4 * (4 * g_pad * D + 2 * g_pad * D + g_pad
                 + 2 * D * num_feat + 2 * D + num_feat)
    # Double-buffered per-node bytes, worst case over the two passes
    # (pass 2 moves x in + out, plus int32 batch ids).
    per_row = 2 * (D * x_itemsize + D * out_itemsize + 2 * 4)
    avail = max(vmem_limit - fixed, per_row * 128)
    cap = avail // per_row
    # Enough traffic per grid step (~2 MiB of x) to amortize the ~0.35us step
    # overhead, but never exceed the problem size or the VMEM cap.
    target = max(2048, (2 * 1024 * 1024) // max(D * x_itemsize, 1))
    tile = min(int(target), int(cap), _round_up(N, 128), 8192)
    return max(128, (tile // 128) * 128)


# ---------------------------------------------------------------------------
# Pass 1: per-graph sum / sum-of-squares / count accumulation + finalize.
# ---------------------------------------------------------------------------
def _egn_stats_kernel(batch_row_ref, x_ref, shift_ref, p_ref, w_ref, e_ref,
                      bias_ref, gscale_ref, goffset_ref,
                      sumx_ref, sumsq_ref, cnt_ref, *,
                      eps, num_graphs_padded, num_valid_nodes):
    i = pl.program_id(0)
    tile_n = x_ref.shape[0]

    @pl.when(i == 0)
    def _init():
        sumx_ref[...] = jnp.zeros_like(sumx_ref)
        sumsq_ref[...] = jnp.zeros_like(sumsq_ref)
        cnt_ref[...] = jnp.zeros_like(cnt_ref)

    # Mask the ragged last tile: out-of-bounds VMEM rows are undefined and must
    # not poison the segment sums (0 * NaN = NaN).
    rows = i * tile_n + lax.broadcasted_iota(jnp.int32, (tile_n, 1), 0)
    x = jnp.where(rows < num_valid_nodes, x_ref[...].astype(jnp.float32), 0.0)

    bids = batch_row_ref[...]                                   # (1, tile_n) int32
    gids = lax.broadcasted_iota(jnp.int32, (num_graphs_padded, tile_n), 0)
    onehot = (gids == bids).astype(jnp.float32)                 # (g_pad, tile_n)

    # Segment sums within the tile via MXU pooling matmuls (long contraction).
    sumx_ref[...] += jnp.dot(onehot, x, preferred_element_type=jnp.float32)
    sumsq_ref[...] += jnp.dot(onehot, x * x, preferred_element_type=jnp.float32)
    cnt_ref[...] += jnp.sum(onehot, axis=1, keepdims=True)      # per-graph counts

    @pl.when(i == pl.num_programs(0) - 1)
    def _finalize():
        inv_c = 1.0 / jnp.maximum(cnt_ref[...], 1.0)            # empty-graph guard
        s = shift_ref[...]                  # (1, D): mean_shift on scalar cols, 0 elsewhere
        sumx = sumx_ref[...]
        mean_g = sumx * inv_c                                   # per-graph mean
        center_g = mean_g * s                                   # centering term
        # sum_n (x - mean*s)^2 = sum(x^2) - (2s - s^2) * sum(x) * mean
        # NOTE: one-pass form; may cancel catastrophically for large-mean /
        # small-variance scalar channels (f32). Acceptable for normalized inputs.
        csum = sumsq_ref[...] - (2.0 * s - s * s) * sumx * mean_g
        # component/norm pooling over each irrep instance + mean over nodes.
        graph_norm = jnp.dot(csum * inv_c, p_ref[...],
                             preferred_element_type=jnp.float32)   # (g_pad, F)
        scale_f = jax.lax.rsqrt(graph_norm + eps) * w_ref[...]     # EUP rsqrt + affine w
        scale_g = jnp.dot(scale_f, e_ref[...],
                          preferred_element_type=jnp.float32)      # (g_pad, D)
        gscale_ref[...] = scale_g
        # Fold bias and centering into one offset so pass 2 is a single FMA:
        # out = x*scale + (bias - center*scale)
        goffset_ref[...] = bias_ref[...] - center_g * scale_g


# ---------------------------------------------------------------------------
# Pass 2: per-node gather of graph tables + fused scale / offset.
# ---------------------------------------------------------------------------
def _egn_apply_kernel(batch_col_ref, x_ref, gscale_ref, goffset_ref, o_ref, *,
                      num_graphs_padded):
    bids = batch_col_ref[...]                                   # (tile_n, 1) int32
    gids = lax.broadcasted_iota(jnp.int32, (bids.shape[0], num_graphs_padded), 1)
    onehot = (gids == bids).astype(jnp.float32)                 # (tile_n, g_pad)
    scale_n = jnp.dot(onehot, gscale_ref[...], preferred_element_type=jnp.float32)
    offset_n = jnp.dot(onehot, goffset_ref[...], preferred_element_type=jnp.float32)
    out = x_ref[...].astype(jnp.float32) * scale_n + offset_n
    o_ref[...] = out.astype(o_ref.dtype)


# ---------------------------------------------------------------------------
# Host-side glue: irreps -> structural matrices / parameter broadcasts.
# irreps = list of (mul, l, p) with p in {+1, -1}.
# ---------------------------------------------------------------------------
def build_irreps_constants(irreps, mean_shift, affine_weight, affine_bias,
                           normalization="component"):
    D = sum(mul * (2 * l + 1) for mul, l, p in irreps)
    F = sum(mul for mul, l, p in irreps)
    P = np.zeros((D, F), np.float32)        # per-irrep component pooling
    E = np.zeros((F, D), np.float32)        # expansion back to full width
    shift = np.zeros((1, D), np.float32)
    bias = np.zeros((1, D), np.float32)
    weight = np.asarray(affine_weight, np.float32).reshape(1, F)
    ms = np.asarray(mean_shift, np.float32).reshape(-1)
    ab = np.asarray(affine_bias, np.float32).reshape(-1)

    col = f = ims = ib = 0
    for mul, l, p in irreps:
        d = 2 * l + 1
        pool_val = (1.0 / d) if normalization == "component" else 1.0
        for _ in range(mul):
            P[col:col + d, f] = pool_val
            E[f, col:col + d] = 1.0
            if l == 0 and p == 1:                 # scalar channel: mean shift + bias
                shift[0, col] = ms[ims]
                bias[0, col] = ab[ib]
                ims += 1
                ib += 1
            col += d
            f += 1
    return P, E, shift, weight, bias, D, F


# ---------------------------------------------------------------------------
# Forward wrapper: two pallas_calls (stats accumulate+finalize, then apply).
# ---------------------------------------------------------------------------
def equivariant_graph_norm(node_input, batch, num_graphs, irreps, mean_shift,
                           affine_weight, affine_bias, eps=1e-5,
                           normalization="component", tile_n=None):
    N, D = node_input.shape
    g_pad = _round_up(max(num_graphs, 1), 8)

    P, E, shift, weight, bias, D_ir, F = build_irreps_constants(
        irreps, mean_shift, affine_weight, affine_bias, normalization)
    assert D_ir == D, "irreps dim mismatch with node_input"

    x_itemsize = jnp.dtype(node_input.dtype).itemsize
    vmem_limit = _scoped_vmem_limit_bytes()
    if tile_n is None:
        tile_n = _choose_tile_n(N, D, x_itemsize, x_itemsize, g_pad, F, vmem_limit)
    tile_n = max(128, _round_up(tile_n, 128))
    num_tiles = -(-N // tile_n)
    n_ids = num_tiles * tile_n

    # Only the tiny batch-id array is padded (sentinel id == g_pad never matches
    # any real or padded graph row); x stays at (N, D) in its native dtype.
    batch = jnp.asarray(batch, jnp.int32)
    batch_pad = jnp.pad(batch, (0, n_ids - N), constant_values=g_pad)
    batch_row = batch_pad.reshape(1, n_ids)
    batch_col = batch_pad.reshape(n_ids, 1)

    shift_j = jnp.asarray(shift)
    P_j = jnp.asarray(P)
    weight_j = jnp.asarray(weight)
    E_j = jnp.asarray(E)
    bias_j = jnp.asarray(bias)

    # ---------------- pass 1: graph statistics -----------------------------
    stats_flops = int(4 * n_ids * g_pad * D + 2 * n_ids * D + 4 * g_pad * D * F)
    stats_bytes = int(x_itemsize * N * D + 4 * n_ids
                      + 4 * (2 * g_pad * D + 2 * D * F + 2 * D + F))
    gscale, goffset = pl.pallas_call(
        functools.partial(_egn_stats_kernel, eps=float(eps),
                          num_graphs_padded=g_pad, num_valid_nodes=N),
        out_shape=(jax.ShapeDtypeStruct((g_pad, D), jnp.float32),
                   jax.ShapeDtypeStruct((g_pad, D), jnp.float32)),
        grid=(num_tiles,),
        in_specs=[
            pl.BlockSpec((1, tile_n), lambda i: (0, i)),        # batch ids (lanes)
            pl.BlockSpec((tile_n, D), lambda i: (i, 0)),        # x tile (native dtype/width)
            pl.BlockSpec((1, D), lambda i: (0, 0)),             # mean_shift (expanded)
            pl.BlockSpec((D, F), lambda i: (0, 0)),             # P pooling
            pl.BlockSpec((1, F), lambda i: (0, 0)),             # affine weight
            pl.BlockSpec((F, D), lambda i: (0, 0)),             # E expansion
            pl.BlockSpec((1, D), lambda i: (0, 0)),             # bias (expanded)
        ],
        out_specs=(pl.BlockSpec((g_pad, D), lambda i: (0, 0)),
                   pl.BlockSpec((g_pad, D), lambda i: (0, 0))),
        scratch_shapes=[pltpu.VMEM((g_pad, D), jnp.float32),
                        pltpu.VMEM((g_pad, D), jnp.float32),
                        pltpu.VMEM((g_pad, 1), jnp.float32)],
        compiler_params=pltpu.CompilerParams(
            dimension_semantics=("arbitrary",),
            vmem_limit_bytes=vmem_limit),
        cost_estimate=pl.CostEstimate(flops=stats_flops,
                                      transcendentals=int(g_pad * F),
                                      bytes_accessed=stats_bytes),
    )(batch_row, node_input, shift_j, P_j, weight_j, E_j, bias_j)

    # ---------------- pass 2: apply -----------------------------------------
    apply_flops = int(4 * n_ids * g_pad * D + 2 * N * D)
    apply_bytes = int(2 * x_itemsize * N * D + 4 * n_ids + 4 * 2 * g_pad * D)
    out = pl.pallas_call(
        functools.partial(_egn_apply_kernel, num_graphs_padded=g_pad),
        out_shape=jax.ShapeDtypeStruct((N, D), node_input.dtype),
        grid=(num_tiles,),
        in_specs=[
            pl.BlockSpec((tile_n, 1), lambda i: (i, 0)),        # batch ids (sublanes)
            pl.BlockSpec((tile_n, D), lambda i: (i, 0)),        # x tile
            pl.BlockSpec((g_pad, D), lambda i: (0, 0)),         # per-graph scale
            pl.BlockSpec((g_pad, D), lambda i: (0, 0)),         # per-graph offset
        ],
        out_specs=pl.BlockSpec((tile_n, D), lambda i: (i, 0)),
        compiler_params=pltpu.CompilerParams(
            dimension_semantics=("parallel",),                  # megacore on v7x
            vmem_limit_bytes=vmem_limit),
        cost_estimate=pl.CostEstimate(flops=apply_flops, transcendentals=0,
                                      bytes_accessed=apply_bytes),
    )(batch_col, node_input, gscale, goffset)

    return out


# ---------------------------------------------------------------------------
# Pure-JAX reference (direct transcription of the PyTorch forward).
# ---------------------------------------------------------------------------
def ref_forward(x, batch, num_graphs, irreps, mean_shift, aw, ab, eps=1e-5):
    counts = jax.ops.segment_sum(jnp.ones_like(batch, jnp.float32), batch,
                                 num_segments=num_graphs)
    fields = []
    ix = iw = ib = ims = 0
    for mul, l, p in irreps:
        d = 2 * l + 1
        field = x[:, ix:ix + mul * d].reshape(-1, mul, d)
        ix += mul * d
        if l == 0 and p == 1:
            fmean = (jax.ops.segment_sum(field, batch, num_segments=num_graphs)
                     / counts[:, None, None])
            ms = mean_shift[ims:ims + mul].reshape(1, mul, 1)
            ims += mul
            field = field - fmean[batch] * ms
        fn = (field ** 2).mean(-1)                                 # 'component'
        fn = jax.ops.segment_sum(fn, batch, num_segments=num_graphs) / counts[:, None]
        fn = (fn + eps) ** -0.5
        fn = fn * aw[None, iw:iw + mul]
        iw += mul
        field = field * fn[batch][:, :, None]
        if d == 1 and p == 1:
            field = field + ab[ib:ib + mul].reshape(1, mul, 1)
            ib += mul
        fields.append(field.reshape(-1, mul * d))
    return jnp.concatenate(fields, axis=-1)


if __name__ == "__main__":
    # irreps = "4x0e + 2x1o + 1x2e"  ->  dim = 4 + 6 + 5 = 15, num_irreps = 7
    irreps = [(4, 0, 1), (2, 1, -1), (1, 2, 1)]
    eps = 1e-5
    N, G = 300, 3
    D = sum(mul * (2 * l + 1) for mul, l, p in irreps)                    # 15
    num_scalar = sum(mul for mul, l, p in irreps if l == 0 and p == 1)    # 4
    num_features = sum(mul for mul, l, p in irreps)                       # 7

    key = jax.random.PRNGKey(0)
    k_x, k_ms, k_w, k_b, k_perm = jax.random.split(key, 5)

    node_input = jax.random.normal(k_x, (N, D), jnp.float32)
    # Unsorted graph assignment over 3 graphs (sizes 110 / 95 / 95).
    base = np.concatenate([np.full(110, 0), np.full(95, 1), np.full(95, 2)]).astype(np.int32)
    perm = np.asarray(jax.random.permutation(k_perm, N))
    batch = jnp.asarray(base[perm], jnp.int32)

    # Parameters: same shapes as the nn.Module; nontrivial deterministic values
    # so the affine / mean-shift paths are actually exercised.
    mean_shift = 1.0 + 0.1 * jax.random.normal(k_ms, (num_scalar,), jnp.float32)
    affine_weight = 1.0 + 0.1 * jax.random.normal(k_w, (num_features,), jnp.float32)
    affine_bias = 0.1 * jax.random.normal(k_b, (num_scalar,), jnp.float32)

    out = equivariant_graph_norm(node_input, batch, G, irreps, mean_shift,
                                 affine_weight, affine_bias, eps=eps,
                                 tile_n=128)   # 3 node tiles + ragged edge
    out = jax.block_until_ready(out)

    ref = ref_forward(node_input, batch, G, irreps, mean_shift, affine_weight,
                      affine_bias, eps=eps)
    ref = jax.block_until_ready(ref)

    assert out.shape == (N, D)
    np.testing.assert_allclose(np.asarray(out), np.asarray(ref),
                               rtol=5e-4, atol=1e-4)

    # Also exercise the auto tile-size / VMEM-budget path once.
    out_auto = jax.block_until_ready(
        equivariant_graph_norm(node_input, batch, G, irreps, mean_shift,
                               affine_weight, affine_bias, eps=eps))
    np.testing.assert_allclose(np.asarray(out_auto), np.asarray(ref),
                               rtol=5e-4, atol=1e-4)
    print("KERNEL_OK")
</pallas_src>

<mosaic_0001>
module attributes {stable_mosaic.version = 11 : i64} {
  func.func @_egn_stats_kernel(%arg0: i32, %arg1: memref<1x128xi32, #tpu.memory_space<vmem>>, %arg2: memref<128x15xf32, #tpu.memory_space<vmem>>, %arg3: memref<1x15xf32, #tpu.memory_space<vmem>>, %arg4: memref<15x7xf32, #tpu.memory_space<vmem>>, %arg5: memref<1x7xf32, #tpu.memory_space<vmem>>, %arg6: memref<7x15xf32, #tpu.memory_space<vmem>>, %arg7: memref<1x15xf32, #tpu.memory_space<vmem>>, %arg8: memref<8x15xf32, #tpu.memory_space<vmem>>, %arg9: memref<8x15xf32, #tpu.memory_space<vmem>>, %arg10: memref<8x15xf32, #tpu.memory_space<vmem>>, %arg11: memref<8x15xf32, #tpu.memory_space<vmem>>, %arg12: memref<8x1xf32, #tpu.memory_space<vmem>>) attributes {dimension_semantics = [#tpu.dimension_semantics<arbitrary>], iteration_bounds = array<i64: 3>, scalar_prefetch = 0 : i64, scratch_operands = 3 : i64, tpu.core_type = #tpu.core_type<tc>, window_params = [{transform_indices = @transform_0, window_bounds = array<i64: 1, 128>}, {transform_indices = @transform_1, window_bounds = array<i64: 128, 15>}, {pipeline_mode = #tpu.pipeline_mode<synchronous>, transform_indices = @transform_2, window_bounds = array<i64: 1, 15>}, {pipeline_mode = #tpu.pipeline_mode<synchronous>, transform_indices = @transform_3, window_bounds = array<i64: 15, 7>}, {pipeline_mode = #tpu.pipeline_mode<synchronous>, transform_indices = @transform_4, window_bounds = array<i64: 1, 7>}, {pipeline_mode = #tpu.pipeline_mode<synchronous>, transform_indices = @transform_5, window_bounds = array<i64: 7, 15>}, {pipeline_mode = #tpu.pipeline_mode<synchronous>, transform_indices = @transform_6, window_bounds = array<i64: 1, 15>}, {pipeline_mode = #tpu.pipeline_mode<synchronous>, transform_indices = @transform_7, window_bounds = array<i64: 8, 15>}, {pipeline_mode = #tpu.pipeline_mode<synchronous>, transform_indices = @transform_8, window_bounds = array<i64: 8, 15>}]} {
    %c0_i32 = arith.constant 0 : i32
    %0 = arith.cmpi eq, %arg0, %c0_i32 : i32
    %1 = arith.extui %0 : i1 to i32
    %c0_i32_0 = arith.constant 0 : i32
    %2 = arith.cmpi ne, %1, %c0_i32_0 : i32
    scf.if %2 {
      %cst_20 = arith.constant 0.000000e+00 : f32
      %37 = vector.broadcast %cst_20 : f32 to vector<8x15xf32>
      %c0_21 = arith.constant 0 : index
      %c0_22 = arith.constant 0 : index
      %38 = vector.load %arg10[%c0_21, %c0_22] : memref<8x15xf32, #tpu.memory_space<vmem>>, vector<8x15xf32>
      tpu.vector_store %arg10[%c0_21, %c0_22], %37 {strides = array<i32>} : memref<8x15xf32, #tpu.memory_space<vmem>>, vector<8x15xf32>,
      %cst_23 = arith.constant 0.000000e+00 : f32
      %39 = vector.broadcast %cst_23 : f32 to vector<8x15xf32>
      %c0_24 = arith.constant 0 : index
      %c0_25 = arith.constant 0 : index
      %40 = vector.load %arg11[%c0_24, %c0_25] : memref<8x15xf32, #tpu.memory_space<vmem>>, vector<8x15xf32>
      tpu.vector_store %arg11[%c0_24, %c0_25], %39 {strides = array<i32>} : memref<8x15xf32, #tpu.memory_space<vmem>>, vector<8x15xf32>,
      %cst_26 = arith.constant 0.000000e+00 : f32
      %41 = vector.broadcast %cst_26 : f32 to vector<8x1xf32>
      %c0_27 = arith.constant 0 : index
      %c0_28 = arith.constant 0 : index
      %42 = vector.load %arg12[%c0_27, %c0_28] : memref<8x1xf32, #tpu.memory_space<vmem>>, vector<8x1xf32>
      tpu.vector_store %arg12[%c0_27, %c0_28], %41 {strides = array<i32>} : memref<8x1xf32, #tpu.memory_space<vmem>>, vector<8x1xf32>,
    } else {
    }
    %c128_i32 = arith.constant 128 : i32
    %3 = arith.muli %arg0, %c128_i32 : i32
    %4 = tpu.iota {dimensions = array<i32: 0>} : vector<128x1xi32>
    %5 = vector.broadcast %3 : i32 to vector<128x1xi32>
    %6 = arith.addi %5, %4 : vector<128x1xi32>
    %c300_i32 = arith.constant 300 : i32
    %7 = vector.broadcast %c300_i32 : i32 to vector<128x1xi32>
    %8 = arith.cmpi slt, %6, %7 : vector<128x1xi32>
    %c0 = arith.constant 0 : index
    %c0_1 = arith.constant 0 : index
    %9 = vector.load %arg2[%c0, %c0_1] : memref<128x15xf32, #tpu.memory_space<vmem>>, vector<128x15xf32>
    %cst = arith.constant 0.000000e+00 : f32
    %10 = vector.shape_cast %8 : vector<128x1xi1> to vector<128x1xi1>
    %11 = vector.broadcast %10 : vector<128x1xi1> to vector<128x15xi1>
    %12 = vector.broadcast %cst : f32 to vector<128x15xf32>
    %13 = arith.select %11, %9, %12 : vector<128x15xi1>, vector<128x15xf32>
    %c0_2 = arith.constant 0 : index
    %c0_3 = arith.constant 0 : index
    %14 = vector.load %arg1[%c0_2, %c0_3] : memref<1x128xi32, #tpu.memory_space<vmem>>, vector<1x128xi32>
    %15 = tpu.iota {dimensions = array<i32: 0>} : vector<8x128xi32>
    %16 = vector.broadcast %14 : vector<1x128xi32> to vector<8x128xi32>
    %17 = arith.cmpi eq, %15, %16 : vector<8x128xi32>
    %18 = arith.extui %17 : vector<8x128xi1> to vector<8x128xi32>
    %19 = arith.sitofp %18 : vector<8x128xi32> to vector<8x128xf32>
    %c0_4 = arith.constant 0 : index
    %c0_5 = arith.constant 0 : index
    %20 = vector.load %arg10[%c0_4, %c0_5] : memref<8x15xf32, #tpu.memory_space<vmem>>, vector<8x15xf32>
    %cst_6 = arith.constant dense<0.000000e+00> : vector<8x15xf32>
    %21 = tpu.matmul %19, %13, %cst_6 {dimension_numbers = #tpu.dot_dimension_numbers<[1], [0], [0], [1], [0, 0, 1, 1], [], []>} : vector<8x128xf32>, vector<128x15xf32>, vector<8x15xf32> -> vector<8x15xf32>
    %22 = arith.addf %20, %21 : vector<8x15xf32>
    %c0_7 = arith.constant 0 : index
    %c0_8 = arith.constant 0 : index
    %23 = vector.load %arg10[%c0_7, %c0_8] : memref<8x15xf32, #tpu.memory_space<vmem>>, vector<8x15xf32>
    tpu.vector_store %arg10[%c0_7, %c0_8], %22 {strides = array<i32>} : memref<8x15xf32, #tpu.memory_space<vmem>>, vector<8x15xf32>,
    %c0_9 = arith.constant 0 : index
    %c0_10 = arith.constant 0 : index
    %24 = vector.load %arg11[%c0_9, %c0_10] : memref<8x15xf32, #tpu.memory_space<vmem>>, vector<8x15xf32>
    %25 = arith.mulf %13, %13 : vector<128x15xf32>
    %cst_11 = arith.constant dense<0.000000e+00> : vector<8x15xf32>
    %26 = tpu.matmul %19, %25, %cst_11 {dimension_numbers = #tpu.dot_dimension_numbers<[1], [0], [0], [1], [0, 0, 1, 1], [], []>} : vector<8x128xf32>, vector<128x15xf32>, vector<8x15xf32> -> vector<8x15xf32>
    %27 = arith.addf %24, %26 : vector<8x15xf32>
    %c0_12 = arith.constant 0 : index
    %c0_13 = arith.constant 0 : index
    %28 = vector.load %arg11[%c0_12, %c0_13] : memref<8x15xf32, #tpu.memory_space<vmem>>, vector<8x15xf32>
    tpu.vector_store %arg11[%c0_12, %c0_13], %27 {strides = array<i32>} : memref<8x15xf32, #tpu.memory_space<vmem>>, vector<8x15xf32>,
    %c0_14 = arith.constant 0 : index
    %c0_15 = arith.constant 0 : index
    %29 = vector.load %arg12[%c0_14, %c0_15] : memref<8x1xf32, #tpu.memory_space<vmem>>, vector<8x1xf32>
    %cst_16 = arith.constant dense<0.000000e+00> : vector<8xf32>
    %30 = vector.multi_reduction <add>, %19, %cst_16 [1] : vector<8x128xf32> to vector<8xf32>
    %31 = vector.shape_cast %30 : vector<8xf32> to vector<8x1xf32>
    %32 = arith.addf %29, %31 : vector<8x1xf32>
    %c0_17 = arith.constant 0 : index
    %c0_18 = arith.constant 0 : index
    %33 = vector.load %arg12[%c0_17, %c0_18] : memref<8x1xf32, #tpu.memory_space<vmem>>, vector<8x1xf32>
    tpu.vector_store %arg12[%c0_17, %c0_18], %32 {strides = array<i32>} : memref<8x1xf32, #tpu.memory_space<vmem>>, vector<8x1xf32>,
    %c2_i32 = arith.constant 2 : i32
    %34 = arith.cmpi eq, %arg0, %c2_i32 : i32
    %35 = arith.extui %34 : i1 to i32
    %c0_i32_19 = arith.constant 0 : i32
    %36 = arith.cmpi ne, %35, %c0_i32_19 : i32
    scf.if %36 {
      %c0_20 = arith.constant 0 : index
      %c0_21 = arith.constant 0 : index
      %37 = vector.load %arg12[%c0_20, %c0_21] : memref<8x1xf32, #tpu.memory_space<vmem>>, vector<8x1xf32>
      %cst_22 = arith.constant 1.000000e+00 : f32
      %38 = vector.broadcast %cst_22 : f32 to vector<8x1xf32>
      %39 = arith.maximumf %37, %38 : vector<8x1xf32>
      %cst_23 = arith.constant 1.000000e+00 : f32
      %40 = vector.broadcast %cst_23 : f32 to vector<8x1xf32>
      %41 = arith.divf %40, %39 : vector<8x1xf32>
      %c0_24 = arith.constant 0 : index
      %c0_25 = arith.constant 0 : index
      %42 = vector.load %arg3[%c0_24, %c0_25] : memref<1x15xf32, #tpu.memory_space<vmem>>, vector<1x15xf32>
      %c0_26 = arith.constant 0 : index
      %c0_27 = arith.constant 0 : index
      %43 = vector.load %arg10[%c0_26, %c0_27] : memref<8x15xf32, #tpu.memory_space<vmem>>, vector<8x15xf32>
      %44 = vector.broadcast %41 : vector<8x1xf32> to vector<8x15xf32>
      %45 = arith.mulf %43, %44 : vector<8x15xf32>
      %46 = vector.broadcast %42 : vector<1x15xf32> to vector<8x15xf32>
      %47 = arith.mulf %45, %46 : vector<8x15xf32>
      %c0_28 = arith.constant 0 : index
      %c0_29 = arith.constant 0 : index
      %48 = vector.load %arg11[%c0_28, %c0_29] : memref<8x15xf32, #tpu.memory_space<vmem>>, vector<8x15xf32>
      %cst_30 = arith.constant 2.000000e+00 : f32
      %49 = vector.broadcast %cst_30 : f32 to vector<1x15xf32>
      %50 = arith.mulf %49, %42 : vector<1x15xf32>
      %51 = arith.mulf %42, %42 : vector<1x15xf32>
      %52 = arith.subf %50, %51 : vector<1x15xf32>
      %53 = vector.broadcast %52 : vector<1x15xf32> to vector<8x15xf32>
      %54 = arith.mulf %53, %43 : vector<8x15xf32>
      %55 = arith.mulf %54, %45 : vector<8x15xf32>
      %56 = arith.subf %48, %55 : vector<8x15xf32>
      %57 = vector.broadcast %41 : vector<8x1xf32> to vector<8x15xf32>
      %58 = arith.mulf %56, %57 : vector<8x15xf32>
      %c0_31 = arith.constant 0 : index
      %c0_32 = arith.constant 0 : index
      %59 = vector.load %arg4[%c0_31, %c0_32] : memref<15x7xf32, #tpu.memory_space<vmem>>, vector<15x7xf32>
      %cst_33 = arith.constant dense<0.000000e+00> : vector<8x7xf32>
      %60 = tpu.matmul %58, %59, %cst_33 {dimension_numbers = #tpu.dot_dimension_numbers<[1], [0], [0], [1], [0, 0, 1, 1], [], []>} : vector<8x15xf32>, vector<15x7xf32>, vector<8x7xf32> -> vector<8x7xf32>
      %cst_34 = arith.constant 9.99999974E-6 : f32
      %61 = vector.broadcast %cst_34 : f32 to vector<8x7xf32>
      %62 = arith.addf %60, %61 : vector<8x7xf32>
      %63 = math.rsqrt %62 : vector<8x7xf32>
      %c0_35 = arith.constant 0 : index
      %c0_36 = arith.constant 0 : index
      %64 = vector.load %arg5[%c0_35, %c0_36] : memref<1x7xf32, #tpu.memory_space<vmem>>, vector<1x7xf32>
      %65 = vector.broadcast %64 : vector<1x7xf32> to vector<8x7xf32>
      %66 = arith.mulf %63, %65 : vector<8x7xf32>
      %c0_37 = arith.constant 0 : index
      %c0_38 = arith.constant 0 : index
      %67 = vector.load %arg6[%c0_37, %c0_38] : memref<7x15xf32, #tpu.memory_space<vmem>>, vector<7x15xf32>
      %cst_39 = arith.constant dense<0.000000e+00> : vector<8x15xf32>
      %68 = tpu.matmul %66, %67, %cst_39 {dimension_numbers = #tpu.dot_dimension_numbers<[1], [0], [0], [1], [0, 0, 1, 1], [], []>} : vector<8x7xf32>, vector<7x15xf32>, vector<8x15xf32> -> vector<8x15xf32>
      %c0_40 = arith.constant 0 : index
      %c0_41 = arith.constant 0 : index
      %69 = vector.load %arg8[%c0_40, %c0_41] : memref<8x15xf32, #tpu.memory_space<vmem>>, vector<8x15xf32>
      tpu.vector_store %arg8[%c0_40, %c0_41], %68 {strides = array<i32>} : memref<8x15xf32, #tpu.memory_space<vmem>>, vector<8x15xf32>,
      %c0_42 = arith.constant 0 : index
      %c0_43 = arith.constant 0 : index
      %70 = vector.load %arg7[%c0_42, %c0_43] : memref<1x15xf32, #tpu.memory_space<vmem>>, vector<1x15xf32>
      %71 = arith.mulf %47, %68 : vector<8x15xf32>
      %72 = vector.broadcast %70 : vector<1x15xf32> to vector<8x15xf32>
      %73 = arith.subf %72, %71 : vector<8x15xf32>
      %c0_44 = arith.constant 0 : index
      %c0_45 = arith.constant 0 : index
      %74 = vector.load %arg9[%c0_44, %c0_45] : memref<8x15xf32, #tpu.memory_space<vmem>>, vector<8x15xf32>
      tpu.vector_store %arg9[%c0_44, %c0_45], %73 {strides = array<i32>} : memref<8x15xf32, #tpu.memory_space<vmem>>, vector<8x15xf32>,
    } else {
    }
    return
  }
  func.func @transform_0(%arg0: i32) -> (i32, i32) {
    %c0_i32 = arith.constant 0 : i32
    %c0_i32_0 = arith.constant 0 : i32
    return %c0_i32, %arg0 : i32, i32
  }
  func.func @transform_1(%arg0: i32) -> (i32, i32) {
    %c0_i32 = arith.constant 0 : i32
    %c0_i32_0 = arith.constant 0 : i32
    return %arg0, %c0_i32 : i32, i32
  }
  func.func @transform_2(%arg0: i32) -> (i32, i32) {
    %c0_i32 = arith.constant 0 : i32
    %c0_i32_0 = arith.constant 0 : i32
    %c0_i32_1 = arith.constant 0 : i32
    return %c0_i32, %c0_i32_0 : i32, i32
  }
  func.func @transform_3(%arg0: i32) -> (i32, i32) {
    %c0_i32 = arith.constant 0 : i32
    %c0_i32_0 = arith.constant 0 : i32
    %c0_i32_1 = arith.constant 0 : i32
    return %c0_i32, %c0_i32_0 : i32, i32
  }
  func.func @transform_4(%arg0: i32) -> (i32, i32) {
    %c0_i32 = arith.constant 0 : i32
    %c0_i32_0 = arith.constant 0 : i32
    %c0_i32_1 = arith.constant 0 : i32
    return %c0_i32, %c0_i32_0 : i32, i32
  }
  func.func @transform_5(%arg0: i32) -> (i32, i32) {
    %c0_i32 = arith.constant 0 : i32
    %c0_i32_0 = arith.constant 0 : i32
    %c0_i32_1 = arith.constant 0 : i32
    return %c0_i32, %c0_i32_0 : i32, i32
  }
  func.func @transform_6(%arg0: i32) -> (i32, i32) {
    %c0_i32 = arith.constant 0 : i32
    %c0_i32_0 = arith.constant 0 : i32
    %c0_i32_1 = arith.constant 0 : i32
    return %c0_i32, %c0_i32_0 : i32, i32
  }
  func.func @transform_7(%arg0: i32) -> (i32, i32) {
    %c0_i32 = arith.constant 0 : i32
    %c0_i32_0 = arith.constant 0 : i32
    %c0_i32_1 = arith.constant 0 : i32
    return %c0_i32, %c0_i32_0 : i32, i32
  }
  func.func @transform_8(%arg0: i32) -> (i32, i32) {
    %c0_i32 = arith.constant 0 : i32
    %c0_i32_0 = arith.constant 0 : i32
    %c0_i32_1 = arith.constant 0 : i32
    return %c0_i32, %c0_i32_0 : i32, i32
  }
}

</mosaic_0001>

<bundles_post_ra>
// kernel: tpu_custom_call.1
= control target key start
LH: loop header
LB: loop body
LE: loop exit
PB: predicated region body
PF: predicated region fallthrough
CT: control target
= control target key end

     0   :  { %14 = vsyncpa [#allocation6], 0  ;;  %s1525_s0 = inlined_call_operand.vmem [shape: s32[1,384], index: 0, kind: input, shape index: {}]   ;;  %s1526_s1 = inlined_call_operand.vmem [shape: f32[300,15], index: 1, kind: input, shape index: {}]   ;;  %s1527_s2 = inlined_call_operand.vmem [shape: f32[1,15], index: 2, kind: input, shape index: {}]   ;;  %s1528_s3 = inlined_call_operand.vmem [shape: f32[15,7], index: 3, kind: input, shape index: {}]   ;;  %s1529_s4 = inlined_call_operand.vmem [shape: f32[1,7], index: 4, kind: input, shape index: {}]   ;;  %s1530_s5 = inlined_call_operand.vmem [shape: f32[7,15], index: 5, kind: input, shape index: {}]   ;;  %s1531_s6 = inlined_call_operand.vmem [shape: f32[1,15], index: 6, kind: input, shape index: {}]   ;;  %s1532_s7 = inlined_call_operand.hbm [shape: f32[8,15], index: 7, kind: output, shape index: {0}]   ;;  %s1533_s8 = inlined_call_operand.hbm [shape: f32[8,15], index: 8, kind: output, shape index: {1}]  }
   0x1   :  { %15 = vsyncpa [#allocation8], 0  ;;  %s1303_s27 = smov 0  }
   0x2 LB: > { %s1309_s28 = sadd.s32 4294967295, %s1244_s27   ;;  %p922_p0 = scmp.ge.s32.totalorder %s1244_s27, 1  ;;  %s1244_s27 = sphi %s1303_s27, %s21_s27  }
   0x3   : > { %p274_p1 = scmp.lt.s32.totalorder %s1244_s27, 4 }
   0x5   : > { %p275_p2 = pnand %p922_p0, %p274_p1 }
   0x6   : > { %p310_p3 = scmp.lt.s32.totalorder (!%p275_p2), %s1309_s28, 2  ;;  %s923_s29 = sshll.u32 (!%p275_p2), %s1309_s28, 4 }
   0x7   : > { %278 = sbr.rel (%p275_p2) target bundleno = 839 (0x347), region = 48  ;;  %p318_p4 = scmp.lt.s32.totalorder (!%p275_p2), %s923_s29, 37 }
   0x8   : > { %p925_p5 = scmp.ne.s32.totalorder (!%p275_p2), %s1309_s28, 0 }
   0xe   : > { %s1316_s30 = scalar_select %p310_p3, %s1309_s28, 2 }
   0xf   : > { %s1537_s29 = smov (!%p318_p4, %s923_s29), 37  ;;  %330 = sbr.rel (%p925_p5) target bundleno = 22 (0x16), region = 52 }
  0x10   : > { %s312_s11 = scalar_lea.vmem %s1525_s0, %s1316_s30  ;;  %s924_s12 = sshll.u32 %s1537_s29, 3  ;;  %vm331_vm0 = vcmask (!%p925_p5), 121856   ;;  %vm334_vm1 = vcmask (!%p925_p5), 7168   ;;  %v1246_v0 = vmov (!%p925_p5), 0.0  }
  0x11   : > { %s1325_s15 = scalar_lea.vmem %s1526_s1, %s924_s12  ;;  %332 = vst.msk [vmem:[#allocation2] sm:$0xff] (!%p925_p5), %vm331_vm0, %v1246_v0  ;;  %333 = vst.msk [vmem:[#allocation3] sm:$0xff] (!%p925_p5), %vm331_vm0, %v1246_v0 }
  0x12   : > { %335 = vst.msk [vmem:[#allocation4] sm:$0xff] (!%p925_p5), %vm334_vm1, %v1246_v0 }
  0x16 PF: > { %s926_s16 = sshll.u32 %s1309_s28, 7  ;;  %v337_v1 = vlaneseq  ;;  %v1247_v2 = vmov 0.0|0.0   ;;  %v387_v4 = vld [vmem:[%s1325_s15] sm:$0xff]  ;;  %v388_v6 = vld [vmem:[%s1325_s15 + $0x8] sm:$0xff]  ;;  %v389_v7 = vld [vmem:[%s1325_s15 + $0x10] sm:$0xff]  ;;  %vm1248_vm2 = vmmov 0  }
  0x17   : > { %1081 = vmatprep.subr.bf16.mxu0 %v1247_v2  ;;  %v1330_v3 = vstv %s926_s16  ;;  %1113 = vmatprep.subr.bf16.mxu1 %v1247_v2  ;;  %v390_v8 = vld [vmem:[%s1325_s15 + $0x18] sm:$0xff]  ;;  %v1249_v9 = vmov 0.0   ;;  %v1082_v10 = vpack.c.bf16 %v388_v6, %v387_v4  ;;  %v391_v28 = vld [vmem:[%s1325_s15 + $0x20] sm:$0xff]  ;;  %v392_v29 = vld [vmem:[%s1325_s15 + $0x28] sm:$0xff]  ;;  %p947_p6 = scmp.ne.s32.totalorder %s1309_s28, 2 }
  0x18   : > { %v1334_v5 = vshrl.u32 %v337_v1, 7  ;;  %1031 = vmatprep.mubr.msk.f32.mxu0 %vm1248_vm2, %v1249_v9  ;;  %1066 = vmatprep.mubr.msk.f32.mxu1 %vm1248_vm2, %v1249_v9  ;;  %v1086_v11 = vpack.c.bf16 %v390_v8, %v389_v7  ;;  %v393_v39 = vld [vmem:[%s1325_s15 + $0x30] sm:$0xff]  ;;  %v394_v42 = vld [vmem:[%s1325_s15 + $0x38] sm:$0xff]  ;;  %v1090_v47 = vpack.c.bf16 %v392_v29, %v391_v28  ;;  %v395_v55 = vld [vmem:[%s1325_s15 + $0x40] sm:$0xff] }
  0x19   : > { %v1094_v54 = vpack.c.bf16 %v394_v42, %v393_v39  ;;  %v396_v56 = vld [vmem:[%s1325_s15 + $0x48] sm:$0xff] }
  0x1a   : > { %v339_v12 = vadd.s32 8, %v1334_v5  ;;  %v355_v13 = vadd.s32 %v1330_v3, %v1334_v5  ;;  %v340_v14 = vadd.s32 16, %v1334_v5  ;;  %v341_v15 = vadd.s32 24, %v1334_v5  ;;  %v533_v49 = vld [vmem:[#allocation3] sm:$0xff] }
  0x1b   : > { %v342_v16 = vadd.s32 32, %v1334_v5  ;;  %v343_v17 = vadd.s32 40, %v1334_v5  ;;  %v344_v18 = vadd.s32 48, %v1334_v5  ;;  %v345_v19 = vadd.s32 56, %v1334_v5 }
  0x1c   : > { %v356_v20 = vadd.s32 %v1330_v3, %v339_v12  ;;  %vm371_vm3 = vcmp.lt.s32.totalorder %v355_v13, 300  ;;  %v357_v21 = vadd.s32 %v1330_v3, %v340_v14  ;;  %v358_v22 = vadd.s32 %v1330_v3, %v341_v15  ;;  %v1405_v12 = vld [vmem:[%s312_s11] ss:$0 sm:$0xff] }
  0x1d   : > { %v435_v23 = vsel %vm371_vm3, %v387_v4, 0.0  ;;  %v359_v24 = vadd.s32 %v1330_v3, %v342_v16  ;;  %v360_v25 = vadd.s32 %v1330_v3, %v343_v17  ;;  %v361_v26 = vadd.s32 %v1330_v3, %v344_v18 }
  0x1e   : > { %vm372_vm4 = vcmp.lt.s32.totalorder %v356_v20, 300  ;;  %v534_v27 = vmul.f32 %v435_v23, %v435_v23  ;;  %vm373_vm5 = vcmp.lt.s32.totalorder %v357_v21, 300  ;;  %vm374_vm6 = vcmp.lt.s32.totalorder %v358_v22, 300  ;;  %v399_v20 = vld [vmem:[%s1325_s15 + $0x60] sm:$0xff]  ;;  %v400_v21 = vld [vmem:[%s1325_s15 + $0x68] sm:$0xff] }
  0x1f   : > { %vm1083_vm7 = vmpackc.low %vm372_vm4, %vm371_vm3  ;;  %v436_v30 = vsel %vm372_vm4, %v388_v6, 0.0  ;;  %v437_v31 = vsel %vm373_vm5, %v389_v7, 0.0  ;;  %v438_v32 = vsel %vm374_vm6, %v390_v8, 0.0  ;;  %vm375_vm8 = vcmp.lt.s32.totalorder %v359_v24, 300  ;;  %v397_v6 = vld [vmem:[%s1325_s15 + $0x50] sm:$0xff]  ;;  %v398_v7 = vld [vmem:[%s1325_s15 + $0x58] sm:$0xff] }
  0x20   : > { %1084 = vmatpush3.bf16.msk.msra.mxu0 %vm1083_vm7, %v1082_v10  ;;  %v535_v33 = vmul.f32 %v436_v30, %v436_v30  ;;  %v536_v34 = vmul.f32 %v437_v31, %v437_v31  ;;  %v537_v35 = vmul.f32 %v438_v32, %v438_v32  ;;  %vm376_vm9 = vcmp.lt.s32.totalorder %v360_v25, 300  ;;  %vm1087_vm10 = vmpackc.low %vm374_vm6, %vm373_vm5  ;;  %v401_v30 = vld [vmem:[%s1325_s15 + $0x70] sm:$0xff] }
  0x21   : > { %1085 = vmatprep.subr.bf16.mxu0 %v1247_v2  ;;  %v439_v36 = vsel %vm375_vm8, %v391_v28, 0.0  ;;  %v440_v37 = vsel %vm376_vm9, %v392_v29, 0.0  ;;  %v362_v38 = vadd.s32 %v1330_v3, %v345_v19  ;;  %vm377_vm11 = vcmp.lt.s32.totalorder %v361_v26, 300  ;;  %vm1373_vm13 = vmpackc.low %vm376_vm9, %vm375_vm8 }
  0x22   : > { %v1114_v40 = vpack.c.bf16 %v535_v33, %v534_v27  ;;  %v538_v41 = vmul.f32 %v439_v36, %v439_v36  ;;  %v539_v43 = vmul.f32 %v440_v37, %v440_v37  ;;  %v346_v44 = vadd.s32 64, %v1334_v5 }
  0x23   : > { %vm378_vm12 = vcmp.lt.s32.totalorder %v362_v38, 300  ;;  %v347_v45 = vadd.s32 72, %v1334_v5  ;;  %v1117_v46 = vpack.c.bf16 %v537_v35, %v536_v34  ;;  %v441_v48 = vsel %vm377_vm11, %v393_v39, 0.0 }
  0x24   : > { %1115 = vmatpush3.bf16.msra.mxu1 %v1114_v40  ;;  %1088 = vmatpush3.bf16.msk.msra.mxu0 %vm1087_vm10, %v1086_v11  ;;  %v442_v50 = vsel %vm378_vm12, %v394_v42, 0.0  ;;  %v363_v51 = vadd.s32 %v1330_v3, %v346_v44  ;;  %v348_v53 = vadd.s32 80, %v1334_v5  ;;  %v349_v57 = vadd.s32 88, %v1334_v5  ;;  %vm1095_vm0 = vmpackc.low %vm378_vm12, %vm377_vm11 }
  0x25   : > { %1116 = vmatprep.subr.bf16.mxu1 %v1247_v2  ;;  %1089 = vmatprep.subr.bf16.mxu0 %v1247_v2  ;;  %v364_v52 = vadd.s32 %v1330_v3, %v347_v45  ;;  %v350_v58 = vadd.s32 96, %v1334_v5  ;;  %v351_v59 = vadd.s32 104, %v1334_v5  ;;  %v1120_v60 = vpack.c.bf16 %v539_v43, %v538_v41  ;;  %v622_v43 = vld [vmem:[#allocation4] sm:$0xff] }
  0x26   : > { %vm379_vm14 = vcmp.lt.s32.totalorder %v363_v51, 300  ;;  %v365_v61 = vadd.s32 %v1330_v3, %v348_v53  ;;  %v540_v62 = vmul.f32 %v441_v48, %v441_v48  ;;  %v541_v63 = vmul.f32 %v442_v50, %v442_v50 }
  0x27   : > { %vm380_vm15 = vcmp.lt.s32.totalorder %v364_v52, 300  ;;  %v366_v0 = vadd.s32 %v1330_v3, %v349_v57  ;;  %v443_v1 = vsel %vm379_vm14, %v395_v55, 0.0  ;;  %v367_v8 = vadd.s32 %v1330_v3, %v350_v58  ;;  %v636_v57 = vld [vmem:[%s1527_s2] sm:$0x1] (!%p947_p6) }
  0x28   : > { %1118 = vmatpush3.bf16.msra.mxu1 %v1117_v46  ;;  %1092 = vmatpush3.bf16.msk.msra.mxu0 %vm1373_vm13, %v1090_v47  ;;  %v444_v4 = vsel %vm380_vm15, %v396_v56, 0.0  ;;  %vm381_vm1 = vcmp.lt.s32.totalorder %v365_v61, 300  ;;  %v368_v10 = vadd.s32 %v1330_v3, %v351_v59  ;;  %v1098_v11 = vpack.c.bf16 %v396_v56, %v395_v55  ;;  %vm1099_vm3 = vmpackc.low %vm380_vm15, %vm379_vm14  ;;  %v459_v46 = vld [vmem:[#allocation2] sm:$0xff]  ;;  %v666_v61 = vld [vmem:[%s1528_s3 + $0x8] sm:$0x7f] (!%p947_p6) }
  0x29   : > { %1119 = vmatprep.subr.bf16.mxu1 %v1247_v2  ;;  %1093 = vmatprep.subr.bf16.mxu0 %v1247_v2  ;;  %vm382_vm2 = vcmp.lt.s32.totalorder %v366_v0, 300  ;;  %v1123_v13 = vpack.c.bf16 %v541_v63, %v540_v62  ;;  %v542_v14 = vmul.f32 %v443_v1, %v443_v1  ;;  %v543_v15 = vmul.f32 %v444_v4, %v444_v4 }
  0x2a   : > { %v352_v16 = vadd.s32 112, %v1334_v5  ;;  %v445_v17 = vsel %vm381_vm1, %v397_v6, 0.0  ;;  %v446_v18 = vsel %vm382_vm2, %v398_v7, 0.0  ;;  %v353_v19 = vadd.s32 120, %v1334_v5  ;;  %vm1103_vm7 = vmpackc.low %vm382_vm2, %vm381_vm1 }
  0x2b   : > { %vm383_vm4 = vcmp.lt.s32.totalorder %v367_v8, 300  ;;  %vm384_vm5 = vcmp.lt.s32.totalorder %v368_v10, 300  ;;  %vm456_vm6 = vcmp.eq.s32.totalorder %v1334_v5, %v1405_v12  ;;  %v1102_v23 = vpack.c.bf16 %v398_v7, %v397_v6 }
  0x2c   : > { %1121 = vmatpush3.bf16.msra.mxu1 %v1120_v60  ;;  %1096 = vmatpush3.bf16.msk.msra.mxu0 %vm1095_vm0, %v1094_v54  ;;  %v369_v22 = vadd.s32 %v1330_v3, %v352_v16  ;;  %v370_v24 = vadd.s32 %v1330_v3, %v353_v19  ;;  %v928_v25 = vsel %vm456_vm6, 1.0, %v1249_v9  ;;  %v1126_v26 = vpack.c.bf16 %v543_v15, %v542_v14  ;;  %v402_v9 = vld [vmem:[%s1325_s15 + $0x78] sm:$0xff]  ;;  %vm1107_vm10 = vmpackc.low %vm384_vm5, %vm383_vm4  ;;  %v665_v60 = vld [vmem:[%s1528_s3] sm:$0xff] (!%p947_p6) }
  0x2d   : > { %1122 = vmatprep.subr.bf16.mxu1 %v1247_v2  ;;  %1097 = vmatprep.subr.bf16.mxu0 %v1247_v2  ;;  %v544_v27 = vmul.f32 %v445_v17, %v445_v17  ;;  %v545_v28 = vmul.f32 %v446_v18, %v446_v18  ;;  %v447_v29 = vsel %vm383_vm4, %v399_v20, 0.0  ;;  %v448_v3 = vsel %vm384_vm5, %v400_v21, 0.0  ;;  %v753_v17 = vld [vmem:[%s1530_s5] sm:$0x7f] (!%p947_p6) }
  0x2e   : > { %vm385_vm8 = vcmp.lt.s32.totalorder %v369_v22, 300  ;;  %vm386_vm9 = vcmp.lt.s32.totalorder %v370_v24, 300  ;;  %623 = vadd.xlane.f32.xlu0 %v928_v25  ;;  %v1106_v31 = vpack.c.bf16 %v400_v21, %v399_v20  ;;  %v546_v33 = vmul.f32 %v447_v29, %v447_v29  ;;  %v950_v21 = vld [vmem:[%s1529_s4] ss:$0 sm:$0xff] (!%p947_p6) }
  0x2f   : > { %v1129_v32 = vpack.c.bf16 %v545_v28, %v544_v27  ;;  %v547_v34 = vmul.f32 %v448_v3, %v448_v3  ;;  %v449_v35 = vsel %vm385_vm8, %v401_v30, 0.0  ;;  %v450_v36 = vsel %vm386_vm9, %v402_v9, 0.0  ;;  %vm1111_vm11 = vmpackc.low %vm386_vm9, %vm385_vm8  ;;  %v953_v25 = vld [vmem:[%s1531_s6] ss:$0 sm:$0xff] (!%p947_p6) }
  0x30   : > { %1124 = vmatpush3.bf16.msra.mxu1 %v1123_v13  ;;  %1100 = vmatpush3.bf16.msk.msra.mxu0 %vm1099_vm3, %v1098_v11  ;;  %v1110_v37 = vpack.c.bf16 %v402_v9, %v401_v30  ;;  %v548_v39 = vmul.f32 %v449_v35, %v449_v35  ;;  %v549_v40 = vmul.f32 %v450_v36, %v450_v36  ;;  %v1250_v42 = vmov 1.0  }
  0x31   : > { %1125 = vmatprep.subr.bf16.mxu1 %v1247_v2  ;;  %1101 = vmatprep.subr.bf16.mxu0 %v1247_v2  ;;  %v1132_v38 = vpack.c.bf16 %v547_v34, %v546_v33  ;;  %vm626_vm12 = vcmask 7168   ;;  %vm531_vm13 = vcmask 121856   ;;  %v647_v54 = vsub.s32 (!%p947_p6), 0, %v1334_v5 }
  0x32   : > { %v1135_v41 = vpack.c.bf16 %v549_v40, %v548_v39  ;;  %v1251_v55 = vmov (!%p947_p6), 0   ;;  %vm670_vm14 = vcmask (!%p947_p6), 1046528   ;;  %v1138_v5 = vpack.c.bf16 (!%p947_p6), %v666_v61, %v665_v60 }
  0x33   : > { %1173 = vset.pattern.permute.xlu0 (!%p947_p6), %v1251_v55  ;;  %v648_v58 = vrot.slane (!%p947_p6), %v636_v57, %v647_v54  ;;  %v1252_v62 = vmov (!%p947_p6), 0.0|0.0   ;;  %vm1253_vm15 = vmmov (!%p947_p6), 1   ;;  %vm1254_vm1 = vmmov (!%p947_p6), 0  }
  0x34   : > { %1127 = vmatpush3.bf16.msra.mxu1 %v1126_v26  ;;  %1104 = vmatpush3.bf16.msk.msra.mxu0 %vm1103_vm7, %v1102_v23  ;;  %vm1139_vm0 = vmpackc.low (!%p947_p6), %vm670_vm14, %vm1253_vm15  ;;  %v1255_v63 = vmov (!%p947_p6), 0.0   ;;  %v652_v0 = vmul.f32 (!%p947_p6), 2.0, %v636_v57  ;;  %v653_v1 = vmul.f32 (!%p947_p6), %v636_v57, %v636_v57  ;;  %vm754_vm2 = vcmask (!%p947_p6), 56320  }
  0x35   : > { %1128 = vmatprep.subr.bf16.mxu1 %v1247_v2  ;;  %1105 = vmatprep.subr.bf16.mxu0 %v1247_v2 }
  0x36   : > { %v654_v4 = vsub.f32 (!%p947_p6), %v652_v0, %v653_v1 }
  0x38   : > { %1130 = vmatpush3.bf16.msra.mxu1 %v1129_v32  ;;  %1108 = vmatpush3.bf16.msk.msra.mxu0 %vm1107_vm10, %v1106_v31  ;;  %v659_v6 = vrot.slane (!%p947_p6), %v654_v4, %v647_v54 }
  0x39   : > { %1131 = vmatprep.subr.bf16.mxu1 %v1247_v2  ;;  %1109 = vmatprep.subr.bf16.mxu0 %v1247_v2 }
  0x3c   : > { %1133 = vmatpush3.bf16.msra.mxu1 %v1132_v38  ;;  %1112 = vmatpush3.bf16.msk.msra.mxu0 %vm1111_vm11, %v1110_v37 }
  0x3d   : > { %1134 = vmatprep.subr.bf16.mxu1 %v1247_v2  ;;  %1137 = vmatprep.subr.bf16.mxu0 (!%p947_p6), %v1252_v62 }
  0x3f   : > { %1032 = vmatmul.mubr.msk.f32.vlgmr.msra.gmra.mrb[0].mxu0 %vm456_vm6, %v1250_v42 }
  0x40   : > { %1136 = vmatpush3.bf16.msra.mxu1 %v1135_v41  ;;  %1140 = vmatpush3.bf16.msk.msra.mxu0 (!%p947_p6), %vm1139_vm0, %v1138_v5 }
  0x41   : > { %1073 = vmatprep.mubr.msk.f32.mxu0 (!%p947_p6), %vm1254_vm1, %v1255_v63  ;;  %1076 = vmatprep.subr.mxu1 (!%p947_p6), %v1255_v63 }
  0x43   : > { %1067 = vmatmul.mubr.msk.f32.vlgmr.msra.gmra.mrb[0].mxu1 %vm456_vm6, %v1250_v42 }
  0x44   : > { %1078 = vmatprep.mubr.msk.f32.mxu1 (!%p947_p6), %vm1254_vm1, %v1255_v63  ;;  %1077 = vmatpush3.msk.msra.mxu1 (!%p947_p6), %vm670_vm14, %v753_v17 }
  0xbb   : > { %v624_v44 = vpop.xlane.xlu0 %623 }
  0xbc   : > { %v625_v45 = vadd.f32 %v624_v44, %v622_v43 }
  0xbe   : > { %627 = vst.msk [vmem:[#allocation4] sm:$0xff] %vm626_vm12, %v625_v45 }
  0xc5   : > { %v632_v53 = vld [vmem:[#allocation4] sm:$0xff] (!%p947_p6) }
  0xc6   : > { %v633_v56 = vmax.f32 (!%p947_p6), %v632_v53, 1.0 }
  0xc8   : > { %1174 = vrcp.f32 (!%p947_p6), %v633_v56 }
  0xd2   : > { %v1175_v59 = vpop.eup (!%p947_p6), %1174 }
  0xd3   : > { %640 = vperm.xlu0 (!%p947_p6), %1173, %v1175_v59  }
 0x112   : > { %v526_v47 = vpop.f32.mrb[0].mxu0 }
 0x113   : > { %v530_v48 = vadd.f32 %v526_v47, %v459_v46  ;;  %v1033_v2 = vpop.f32.mrb[1].mxu0  ;;  %631 = sbr.rel (%p947_p6) target bundleno = 791 (0x317), region = 56 }
 0x115   : > { %532 = vst.msk [vmem:[#allocation2] sm:$0xff] %vm531_vm13, %v530_v48 }
 0x116   : > { %v616_v50 = vpop.f32.mrb[0].mxu1 }
 0x117   : > { %v620_v51 = vadd.f32 %v616_v50, %v533_v49  ;;  %v1068_v52 = vpop.f32.mrb[1].mxu1 }
 0x119   : > { %621 = vst.msk [vmem:[#allocation3] sm:$0xff] %vm531_vm13, %v620_v51 }
 0x11c   : > { %v637_v7 = vld [vmem:[#allocation2] sm:$0xff] }
 0x11d   : > { %v661_v8 = vmul.f32 %v659_v6, %v637_v7 }
 0x120   : > { %v651_v12 = vld [vmem:[#allocation3] sm:$0xff] }
 0x152   : > { %v641_v10 = vpop.permute.xlu0 %640 }
 0x153   : > { %v643_v11 = vmul.f32 %v641_v10, %v637_v7 }
 0x155   : > { %v650_v13 = vmul.f32 %v648_v58, %v643_v11  ;;  %v662_v14 = vmul.f32 %v661_v8, %v643_v11 }
 0x157   : > { %v663_v15 = vsub.f32 %v651_v12, %v662_v14 }
 0x159   : > { %v664_v16 = vmul.f32 %v663_v15, %v641_v10 }
 0x15b   : > { %1074 = vmatmul.mubr.msk.f32.vlgmr.msra.gmra.mrb[0].mxu0 %vm531_vm13, %v664_v16 }
 0x22e   : > { %v740_v18 = vpop.f32.mrb[0].mxu0 }
 0x22f   : > { %v741_v19 = vadd.f32 1e-05, %v740_v18  ;;  %v1075_v20 = vpop.f32.mrb[1].mxu0 }
 0x231   : > { %1176 = vrsqrt.f32 %v741_v19 }
 0x23b   : > { %v1177_v22 = vpop.eup %1176 }
 0x23c   : > { %v752_v23 = vmul.f32 %v1177_v22, %v950_v21 }
 0x23e   : > { %1079 = vmatmul.mubr.msk.f32.vlgmr.msra.gmra.mrb[0].mxu1 %vm754_vm2, %v752_v23 }
 0x311   : > { %v827_v24 = vpop.f32.mrb[0].mxu1 }
 0x312   : > { %831 = vst.msk [vmem:[#allocation5] sm:$0xff] %vm531_vm13, %v827_v24  ;;  %v833_v26 = vmul.f32 %v827_v24, %v650_v13  ;;  %v1080_v27 = vpop.f32.mrb[1].mxu1 }
 0x314   : > { %v840_v28 = vsub.f32 %v953_v25, %v833_v26 }
 0x316   : > { %841 = vst.msk [vmem:[#allocation7] sm:$0xff] %vm531_vm13, %v840_v28 }
 0x317 PF: > { %p1149_p7 = scmp.eq.s32.totalorder %s1309_s28, 2  ;;  %s1256_s11 = smov [#allocation5]  }
 0x318   : > { %s849_s12 = sshll.u32 %s1256_s11, 4  ;;  %s1257_s13 = smov [#allocation7]   ;;  %s850_s12 = int_to_ptr.vmem [resolvable:$true] %s849_s12 }
 0x319   : > { %s860_s14 = sshll.u32 %s1257_s13, 4  ;;  %s1178_s15 = scalar_lea.vmem %s850_s12, 128  ;;  %s861_s14 = int_to_ptr.vmem [resolvable:$true] %s860_s14 }
 0x31a   : > { %p1179_p8 = scmp.ne.s32.totalorder %s850_s12, %s1178_s15  ;;  %p1185_p11 = scmp.lt.s32.totalorder %s850_s12, %s850_s12 }
 0x31b   : > { %p1186_p12 = scmp.lt.s32.totalorder %s1178_s15, %s1178_s15 }
 0x31c   : > { %p1180_p9 = pnand %p1179_p8, %p1149_p7 }
 0x31d   : > { %p1187_p13 = por %p1186_p12, %p1185_p11 }
 0x31e   : > { %p1181_p10 = pneg %p1180_p9 }
 0x320   : > { %p1188_p0 = pnand %p1187_p13, %p1181_p10 }
 0x322   : > { %1191 = shalt.err (!%p1188_p0)
}
 0x323   : > { %s1192_s18 = scalar_lea.hbm %s1532_s7, 128 }
 0x324   : > { %p1193_p1 = scmp.ne.s32.totalorder %s1532_s7, %s1192_s18  ;;  %p1198_p4 = scmp.lt.u32.totalorder %s1192_s18, %s1532_s7 }
 0x326   : > { %p1194_p2 = pnand %p1193_p1, %p1149_p7 }
 0x328   : > { %p1195_p3 = pneg %p1194_p2 }
 0x32a   : > { %p1200_p5 = pnand %p1198_p4, %p1195_p3 }
 0x32c   : > { %1203 = shalt.err (!%p1200_p5)
}
 0x32d   : > { %1142 = dma.vmem_to_hbm [thread:$0]  (%p1149_p7), %s850_s12, 128, %s1532_s7, [#allocation6]  }
 0x32e   : > { %s1204_s25 = scalar_lea.vmem %s861_s14, 128  ;;  %p1211_p10 = scmp.lt.s32.totalorder %s861_s14, %s861_s14 }
 0x32f   : > { %p1205_p6 = scmp.ne.s32.totalorder %s861_s14, %s1204_s25  ;;  %p1212_p11 = scmp.lt.s32.totalorder %s1204_s25, %s1204_s25 }
 0x331   : > { %p1206_p8 = pnand %p1205_p6, %p1149_p7  ;;  %p1213_p12 = por %p1212_p11, %p1211_p10 }
 0x333   : > { %p1207_p9 = pneg %p1206_p8 }
 0x335   : > { %p1214_p13 = pnand %p1213_p12, %p1207_p9 }
 0x337   : > { %1217 = shalt.err (!%p1214_p13)
}
 0x338   : > { %s1218_s30 = scalar_lea.hbm %s1533_s8, 128 }
 0x339   : > { %p1219_p0 = scmp.ne.s32.totalorder %s1533_s8, %s1218_s30  ;;  %p1224_p3 = scmp.lt.u32.totalorder %s1218_s30, %s1533_s8 }
 0x33b   : > { %p1220_p1 = pnand %p1219_p0, %p1149_p7 }
 0x33d   : > { %p1221_p2 = pneg %p1220_p1 }
 0x33f   : > { %p1226_p4 = pnand %p1224_p3, %p1221_p2 }
 0x341   : > { %1229 = shalt.err (!%p1226_p4)
}
 0x342   : > { %1144 = dma.vmem_to_hbm [thread:$0]  (%p1149_p7), %s861_s14, 128, %s1533_s8, [#allocation8]  }
 0x343   : > { %1235 = dma.done.wait (%p1149_p7), [#allocation6], 128  }
 0x344   : > { %1237 = vsyncadd (%p1149_p7), [#allocation6], 4294967168 }
 0x345   : > { %1239 = dma.done.wait (%p1149_p7), [#allocation8], 128  }
 0x346   : > { %1241 = vsyncadd (%p1149_p7), [#allocation8], 4294967168 }
 0x347 PF: > { %s21_s27 = sadd.s32 1, %s1244_s27  }
 0x348   : > { %p18_p5 = scmp.ge.s32.totalorder %s21_s27, 5  }
 0x34a   :  { %20 = sbr.rel (!%p18_p5) target bundleno = 2 (0x2), region = 94 }
 0x351   :  { %877 = vsyncpa [#allocation6], 1 }
 0x352   :  { %879 = vsyncpa [#allocation6 + $0x1], 1 }
 0x353   :  { %880 = vsyncpa [#allocation8], 1 }

</bundles_post_ra>
